<compile_context>
chip_gen: v7x
topology: tpu7x:2x2x1
jax: 0.10.0
libtpu: 0.0.40
codegen_flags: <defaults>
</compile_context>

<pallas_src>
import functools

import jax
import jax.numpy as jnp
from jax.experimental import pallas as pl
from jax.experimental.pallas import tpu as pltpu


def _round_up(x, m):
    return (x + m - 1) // m * m


def _eodep_sym_kernel(il_ref, jl_ref, zr_ref, zcT_ref, sci_ref, scj_ref,
                      sqi_ref, sqj_ref, out_ref, q_acc, *, tt):
    """One upper-triangular tile pair (i, j) of Q = K_z @ S_c (K_z symmetric)."""
    p = pl.program_id(0)

    @pl.when(p == 0)
    def _init():
        q_acc[...] = jnp.zeros_like(q_acc)

    i = il_ref[p]
    j = jl_ref[p]

    # Gram tile of the pre-scaled z: canonical (tt, d) @ (d, tt) MXU matmul
    # (column operand was pre-transposed in the wrapper -> no per-tile vxpose).
    g = jnp.dot(zr_ref[...], zcT_ref[...], preferred_element_type=jnp.float32)

    # RBF with the -1/(2 sigma^2) scale folded into z:
    #   exponent = -||zs_i - zs_j||^2 = 2 g - |zs_i|^2 - |zs_j|^2   (<= 0)
    expo = jnp.minimum(2.0 * g - sqi_ref[...] - sqj_ref[...], 0.0)
    k_z = jnp.exp(expo)                                   # (tt, tt) f32, EUP
    k_zc = k_z.astype(scj_ref.dtype)                      # MXU operand cast (bf16)

    # Q[i-block rows] += k_z @ S_c[j-block]   (skinny MXU matmul, f32 accumulate)
    row_i = pl.multiple_of(i * tt, tt)
    q_acc[pl.ds(row_i, tt), :] += jnp.dot(
        k_zc, scj_ref[...], preferred_element_type=jnp.float32)

    @pl.when(i != j)
    def _off_diag():
        # K_z[j-rows, i-cols] == k_z^T : contract dim 0 -> no materialized transpose.
        q_j = jax.lax.dot_general(k_zc, sci_ref[...],
                                  (((0,), (0,)), ((), ())),
                                  preferred_element_type=jnp.float32)
        row_j = pl.multiple_of(j * tt, tt)
        q_acc[pl.ds(row_j, tt), :] += q_j

    @pl.when(p == pl.num_programs(0) - 1)
    def _finalize():
        q = q_acc[...]
        out_ref[...] = jnp.sum(q * q, axis=-1, keepdims=True)     # (n_pad, 1)


def _prepare(z, s_labels, y, *, num_classes, sigma_z, tile, compute_dtype):
    """Wrapper-side glue: all O(N*C)/O(N*d) — mask, centered one-hot, scaling, padding."""
    z = z.astype(jnp.float32)
    n, d = z.shape
    c = num_classes

    mask_f = (y == 1).astype(jnp.float32)                 # (N,)
    n_m = jnp.sum(mask_f)
    # Spec pdb's on an empty mask; we guard the divisions so the result is a
    # finite 0 instead of NaN.
    n_m_safe = jnp.maximum(n_m, 1.0)

    s_oh = jax.nn.one_hot(s_labels.astype(jnp.int32), c, dtype=jnp.float32)
    s_oh = s_oh * mask_f[:, None]
    s_c = (s_oh - jnp.sum(s_oh, axis=0, keepdims=True) / n_m_safe) * mask_f[:, None]

    # Fold -1/(2 sigma^2) into z so the kernel computes exp(2g - |zi|^2 - |zj|^2).
    zs = z * jnp.float32(1.0 / (float(sigma_z) * (2.0 ** 0.5)))

    t = min(int(tile), _round_up(n, 128))                 # lane-aligned tile
    n_pad = _round_up(n, t)
    pad = n_pad - n

    zq = jnp.pad(zs, ((0, pad), (0, 0))).astype(compute_dtype)   # (n_pad, d)
    zqT = zq.T                                                   # one O(N*d) transpose
    # Squared norms of the (possibly bf16-quantized) scaled z, kept in f32 so the
    # exponent is consistent with the bf16 Gram products (diagonal -> exactly 0).
    sq = jnp.sum(zq.astype(jnp.float32) ** 2, axis=-1)           # (n_pad,)
    sq_row = sq[:, None]                                         # (n_pad, 1)
    sq_col = sq[None, :]                                         # (1, n_pad)
    scq = jnp.pad(s_c, ((0, pad), (0, 0))).astype(compute_dtype) # (n_pad, C)
    mask_p = jnp.pad(mask_f, (0, pad))                           # (n_pad,)

    return dict(zq=zq, zqT=zqT, scq=scq, sq_row=sq_row, sq_col=sq_col,
                mask_p=mask_p, n_m=n_m, n_m_safe=n_m_safe,
                t=t, n_pad=n_pad, d=d, c=c)


def eodep_loss_pallas(z, s_labels, y, norm=None, *, num_classes, sigma_z=1.0,
                      tile=512, compute_dtype=jnp.bfloat16):
    ops = _prepare(z, s_labels, y, num_classes=num_classes, sigma_z=sigma_z,
                   tile=tile, compute_dtype=compute_dtype)
    t, n_pad, d, c = ops["t"], ops["n_pad"], ops["d"], ops["c"]
    nt = n_pad // t

    # Upper-triangular tile pairs, row-major: consecutive steps share the row
    # block, so its z / S_c / |z|^2 tiles are not re-fetched by the pipeline.
    pairs = [(i, j) for i in range(nt) for j in range(i, nt)]
    i_list = jnp.asarray([p[0] for p in pairs], dtype=jnp.int32)
    j_list = jnp.asarray([p[1] for p in pairs], dtype=jnp.int32)

    kernel = functools.partial(_eodep_sym_kernel, tt=t)

    row_part = pl.pallas_call(
        kernel,
        out_shape=jax.ShapeDtypeStruct((n_pad, 1), jnp.float32),
        grid_spec=pltpu.PrefetchScalarGridSpec(
            num_scalar_prefetch=2,            # i_list, j_list -> SMEM
            grid=(len(pairs),),
            in_specs=[
                pl.BlockSpec((t, d), lambda p, il, jl: (il[p], 0)),   # z row tile
                pl.BlockSpec((d, t), lambda p, il, jl: (0, jl[p])),   # z^T col tile
                pl.BlockSpec((t, c), lambda p, il, jl: (il[p], 0)),   # S_c, block i
                pl.BlockSpec((t, c), lambda p, il, jl: (jl[p], 0)),   # S_c, block j
                pl.BlockSpec((t, 1), lambda p, il, jl: (il[p], 0)),   # |z_i|^2
                pl.BlockSpec((1, t), lambda p, il, jl: (0, jl[p])),   # |z_j|^2
            ],
            out_specs=pl.BlockSpec((n_pad, 1), lambda p, il, jl: (0, 0)),
            scratch_shapes=[pltpu.VMEM((n_pad, c), jnp.float32)],     # persistent Q
        ),
        compiler_params=pltpu.CompilerParams(
            # Single reduction axis (shared Q accumulator) -> "arbitrary".
            dimension_semantics=("arbitrary",),
            # Fits comfortably for t<=512; per v7x guidance keep <= ~56 MiB.
            vmem_limit_bytes=32 * 1024 * 1024,
        ),
    )(i_list, j_list, ops["zq"], ops["zqT"], ops["scq"], ops["scq"],
      ops["sq_row"], ops["sq_col"])

    # Row mask (y==1) applied in the O(N) epilogue; padded rows have mask 0.
    dep = jnp.sum(row_part[:, 0] * ops["mask_p"])
    if norm is not None:
        dep = dep * (1.0 / (norm * ops["n_m_safe"]))     # reciprocal-multiply epilogue
    return dep


# ----------------------------- references (tests) -----------------------------

def eodep_loss_ref(z, s_labels, y, norm=None, *, num_classes, sigma_z=1.0):
    """Pure-JAX mirror of the PyTorch forward (f32, HIGHEST-precision matmuls)."""
    hp = jax.lax.Precision.HIGHEST
    idx = jnp.nonzero(y == 1)[0]            # concrete inputs -> eager nonzero is fine
    z = z[idx].astype(jnp.float32)
    s = jax.nn.one_hot(s_labels[idx].astype(jnp.int32), num_classes,
                       dtype=jnp.float32)
    n_m = z.shape[0]
    sq = jnp.sum(z * z, axis=-1)
    g = jnp.matmul(z, z.T, precision=hp)
    d2 = jnp.maximum(sq[:, None] + sq[None, :] - 2.0 * g, 0.0)
    k_z = jnp.exp(-d2 / (2.0 * sigma_z ** 2))
    k_s = jnp.matmul(s, s.T, precision=hp)
    mc = lambda k: k - jnp.mean(k, axis=0, keepdims=True)
    k_sm = mc(mc(k_s).T)
    k_zm = mc(k_z)
    dep = jnp.trace(jnp.matmul(jnp.matmul(k_zm.T, k_sm, precision=hp),
                               k_zm, precision=hp))
    if norm is not None:
        dep = dep / (norm * n_m)
    return dep


def eodep_loss_dense_from_ops(ops, norm):
    """Dense-JAX evaluation of the exact (quantized) arithmetic the kernel does."""
    hp = jax.lax.Precision.HIGHEST
    zf = ops["zq"].astype(jnp.float32)
    g = jnp.matmul(zf, zf.T, precision=hp)
    expo = jnp.minimum(2.0 * g - ops["sq_row"] - ops["sq_col"], 0.0)
    k_z = jnp.exp(expo).astype(ops["scq"].dtype).astype(jnp.float32)
    q = jnp.matmul(k_z, ops["scq"].astype(jnp.float32), precision=hp)
    dep = jnp.sum(jnp.sum(q * q, axis=-1) * ops["mask_p"])
    if norm is not None:
        dep = dep * (1.0 / (norm * ops["n_m_safe"]))
    return dep


if __name__ == "__main__":
    key = jax.random.PRNGKey(0)

    def run_case(n, d, c, sigma, tile, norm):
        kz, ks, ky = jax.random.split(jax.random.fold_in(key, n), 3)
        z = jax.random.normal(kz, (n, d), dtype=jnp.float32)
        s = jax.random.randint(ks, (n,), 0, c)
        y = jax.random.randint(ky, (n,), 0, 2)
        y = y.at[0].set(1)      # guarantee a non-empty y == 1 mask (spec pdb's on empty)

        dep_ref = eodep_loss_ref(z, s, y, norm, num_classes=c, sigma_z=sigma)

        # Exact (f32) path: tight check against the spec-mirror reference.
        dep_f32 = jax.block_until_ready(
            eodep_loss_pallas(z, s, y, norm, num_classes=c, sigma_z=sigma,
                              tile=tile, compute_dtype=jnp.float32))
        assert not jnp.isnan(dep_f32), "f32 dep is NaN"
        assert jnp.allclose(dep_f32, dep_ref, rtol=2e-3, atol=1e-5), \
            ("f32", n, dep_f32, dep_ref)

        # Fast (bf16 MXU operand) path: check against a dense JAX evaluation of the
        # identical quantized arithmetic, plus a loose sanity check vs the spec ref.
        dep_bf16 = jax.block_until_ready(
            eodep_loss_pallas(z, s, y, norm, num_classes=c, sigma_z=sigma,
                              tile=tile, compute_dtype=jnp.bfloat16))
        ops = _prepare(z, s, y, num_classes=c, sigma_z=sigma, tile=tile,
                       compute_dtype=jnp.bfloat16)
        dep_match = eodep_loss_dense_from_ops(ops, norm)
        assert not jnp.isnan(dep_bf16), "bf16 dep is NaN"
        assert jnp.allclose(dep_bf16, dep_match, rtol=5e-3, atol=1e-4), \
            ("bf16-matched", n, dep_bf16, dep_match)
        assert jnp.allclose(dep_bf16, dep_ref, rtol=0.25, atol=1e-2), \
            ("bf16-vs-ref", n, dep_bf16, dep_ref)

    # Small case: single tile pair, 1-step grid (shapes consistent with the module).
    run_case(n=8, d=32, c=4, sigma=4.0, tile=512, norm=1.0)
    # Multi-tile case: N > tile, N % tile != 0 — exercises padding, the (i != j)
    # symmetric accumulation, and the cross-step persistent Q accumulator.
    run_case(n=700, d=32, c=4, sigma=4.0, tile=256, norm=1.0)

    print("KERNEL_OK")
</pallas_src>

<mosaic_0001>
module attributes {stable_mosaic.version = 11 : i64} {
  func.func @_eodep_sym_kernel(%arg0: i32, %arg1: memref<1xi32, #tpu.memory_space<smem>>, %arg2: memref<1xi32, #tpu.memory_space<smem>>, %arg3: memref<128x32xf32, #tpu.memory_space<vmem>>, %arg4: memref<32x128xf32, #tpu.memory_space<vmem>>, %arg5: memref<128x4xf32, #tpu.memory_space<vmem>>, %arg6: memref<128x4xf32, #tpu.memory_space<vmem>>, %arg7: memref<128x1xf32, #tpu.memory_space<vmem>>, %arg8: memref<1x128xf32, #tpu.memory_space<vmem>>, %arg9: memref<128x1xf32, #tpu.memory_space<vmem>>, %arg10: memref<128x4xf32, #tpu.memory_space<vmem>>) attributes {dimension_semantics = [#tpu.dimension_semantics<arbitrary>], iteration_bounds = array<i64: 1>, scalar_prefetch = 2 : i64, scratch_operands = 1 : i64, tpu.core_type = #tpu.core_type<tc>, window_params = [{transform_indices = @transform_0, window_bounds = array<i64: 128, 32>}, {transform_indices = @transform_1, window_bounds = array<i64: 32, 128>}, {transform_indices = @transform_2, window_bounds = array<i64: 128, 4>}, {transform_indices = @transform_3, window_bounds = array<i64: 128, 4>}, {transform_indices = @transform_4, window_bounds = array<i64: 128, 1>}, {transform_indices = @transform_5, window_bounds = array<i64: 1, 128>}, {pipeline_mode = #tpu.pipeline_mode<synchronous>, transform_indices = @transform_6, window_bounds = array<i64: 128, 1>}]} {
    %c0_i32 = arith.constant 0 : i32
    %0 = arith.cmpi eq, %arg0, %c0_i32 : i32
    %1 = arith.extui %0 : i1 to i32
    %c0_i32_0 = arith.constant 0 : i32
    %2 = arith.cmpi ne, %1, %c0_i32_0 : i32
    scf.if %2 {
      %cst_18 = arith.constant 0.000000e+00 : f32
      %36 = vector.broadcast %cst_18 : f32 to vector<128x4xf32>
      %c0_19 = arith.constant 0 : index
      %c0_20 = arith.constant 0 : index
      %37 = vector.load %arg10[%c0_19, %c0_20] : memref<128x4xf32, #tpu.memory_space<vmem>>, vector<128x4xf32>
      tpu.vector_store %arg10[%c0_19, %c0_20], %36 {strides = array<i32>} : memref<128x4xf32, #tpu.memory_space<vmem>>, vector<128x4xf32>,
    } else {
    }
    %3 = arith.index_cast %arg0 : i32 to index
    %4 = memref.load %arg1[%3] : memref<1xi32, #tpu.memory_space<smem>>
    %5 = arith.index_cast %arg0 : i32 to index
    %6 = memref.load %arg2[%5] : memref<1xi32, #tpu.memory_space<smem>>
    %c0 = arith.constant 0 : index
    %c0_1 = arith.constant 0 : index
    %7 = vector.load %arg3[%c0, %c0_1] : memref<128x32xf32, #tpu.memory_space<vmem>>, vector<128x32xf32>
    %c0_2 = arith.constant 0 : index
    %c0_3 = arith.constant 0 : index
    %8 = vector.load %arg4[%c0_2, %c0_3] : memref<32x128xf32, #tpu.memory_space<vmem>>, vector<32x128xf32>
    %cst = arith.constant dense<0.000000e+00> : vector<128x128xf32>
    %9 = tpu.matmul %7, %8, %cst {dimension_numbers = #tpu.dot_dimension_numbers<[1], [0], [0], [1], [0, 0, 1, 1], [], []>} : vector<128x32xf32>, vector<32x128xf32>, vector<128x128xf32> -> vector<128x128xf32>
    %cst_4 = arith.constant 2.000000e+00 : f32
    %10 = vector.broadcast %cst_4 : f32 to vector<128x128xf32>
    %11 = arith.mulf %10, %9 : vector<128x128xf32>
    %c0_5 = arith.constant 0 : index
    %c0_6 = arith.constant 0 : index
    %12 = vector.load %arg7[%c0_5, %c0_6] : memref<128x1xf32, #tpu.memory_space<vmem>>, vector<128x1xf32>
    %13 = vector.broadcast %12 : vector<128x1xf32> to vector<128x128xf32>
    %14 = arith.subf %11, %13 : vector<128x128xf32>
    %c0_7 = arith.constant 0 : index
    %c0_8 = arith.constant 0 : index
    %15 = vector.load %arg8[%c0_7, %c0_8] : memref<1x128xf32, #tpu.memory_space<vmem>>, vector<1x128xf32>
    %16 = vector.broadcast %15 : vector<1x128xf32> to vector<128x128xf32>
    %17 = arith.subf %14, %16 : vector<128x128xf32>
    %cst_9 = arith.constant 0.000000e+00 : f32
    %18 = vector.broadcast %cst_9 : f32 to vector<128x128xf32>
    %19 = arith.minimumf %17, %18 : vector<128x128xf32>
    %20 = math.exp %19 : vector<128x128xf32>
    %c128_i32 = arith.constant 128 : i32
    %21 = arith.muli %4, %c128_i32 : i32
    %22 = tpu.assume_multiple %21, 128 : i32
    %23 = arith.index_cast %22 : i32 to index
    %c0_10 = arith.constant 0 : index
    %24 = vector.load %arg10[%23, %c0_10] : memref<128x4xf32, #tpu.memory_space<vmem>>, vector<128x4xf32>
    %c0_11 = arith.constant 0 : index
    %c0_12 = arith.constant 0 : index
    %25 = vector.load %arg6[%c0_11, %c0_12] : memref<128x4xf32, #tpu.memory_space<vmem>>, vector<128x4xf32>
    %cst_13 = arith.constant dense<0.000000e+00> : vector<128x4xf32>
    %26 = tpu.matmul %20, %25, %cst_13 {dimension_numbers = #tpu.dot_dimension_numbers<[1], [0], [0], [1], [0, 0, 1, 1], [], []>} : vector<128x128xf32>, vector<128x4xf32>, vector<128x4xf32> -> vector<128x4xf32>
    %27 = arith.addf %24, %26 : vector<128x4xf32>
    %28 = arith.index_cast %22 : i32 to index
    %c0_14 = arith.constant 0 : index
    %29 = vector.load %arg10[%28, %c0_14] : memref<128x4xf32, #tpu.memory_space<vmem>>, vector<128x4xf32>
    tpu.vector_store %arg10[%28, %c0_14], %27 {strides = array<i32>} : memref<128x4xf32, #tpu.memory_space<vmem>>, vector<128x4xf32>,
    %30 = arith.cmpi ne, %4, %6 : i32
    %31 = arith.extui %30 : i1 to i32
    %c0_i32_15 = arith.constant 0 : i32
    %32 = arith.cmpi ne, %31, %c0_i32_15 : i32
    scf.if %32 {
      %c0_18 = arith.constant 0 : index
      %c0_19 = arith.constant 0 : index
      %36 = vector.load %arg5[%c0_18, %c0_19] : memref<128x4xf32, #tpu.memory_space<vmem>>, vector<128x4xf32>
      %cst_20 = arith.constant dense<0.000000e+00> : vector<128x4xf32>
      %37 = tpu.matmul %20, %36, %cst_20 {dimension_numbers = #tpu.dot_dimension_numbers<[0], [0], [1], [1], [0, 1, 1, 1], [], []>} : vector<128x128xf32>, vector<128x4xf32>, vector<128x4xf32> -> vector<128x4xf32>
      %c128_i32_21 = arith.constant 128 : i32
      %38 = arith.muli %6, %c128_i32_21 : i32
      %39 = tpu.assume_multiple %38, 128 : i32
      %40 = arith.index_cast %39 : i32 to index
      %c0_22 = arith.constant 0 : index
      %41 = vector.load %arg10[%40, %c0_22] : memref<128x4xf32, #tpu.memory_space<vmem>>, vector<128x4xf32>
      %42 = arith.addf %41, %37 : vector<128x4xf32>
      %43 = arith.index_cast %39 : i32 to index
      %c0_23 = arith.constant 0 : index
      %44 = vector.load %arg10[%43, %c0_23] : memref<128x4xf32, #tpu.memory_space<vmem>>, vector<128x4xf32>
      tpu.vector_store %arg10[%43, %c0_23], %42 {strides = array<i32>} : memref<128x4xf32, #tpu.memory_space<vmem>>, vector<128x4xf32>,
    } else {
    }
    %c0_i32_16 = arith.constant 0 : i32
    %33 = arith.cmpi eq, %arg0, %c0_i32_16 : i32
    %34 = arith.extui %33 : i1 to i32
    %c0_i32_17 = arith.constant 0 : i32
    %35 = arith.cmpi ne, %34, %c0_i32_17 : i32
    scf.if %35 {
      %c0_18 = arith.constant 0 : index
      %c0_19 = arith.constant 0 : index
      %36 = vector.load %arg10[%c0_18, %c0_19] : memref<128x4xf32, #tpu.memory_space<vmem>>, vector<128x4xf32>
      %37 = arith.mulf %36, %36 : vector<128x4xf32>
      %cst_20 = arith.constant dense<0.000000e+00> : vector<128xf32>
      %38 = vector.multi_reduction <add>, %37, %cst_20 [1] : vector<128x4xf32> to vector<128xf32>
      %39 = vector.shape_cast %38 : vector<128xf32> to vector<128x1xf32>
      %c0_21 = arith.constant 0 : index
      %c0_22 = arith.constant 0 : index
      %40 = vector.load %arg9[%c0_21, %c0_22] : memref<128x1xf32, #tpu.memory_space<vmem>>, vector<128x1xf32>
      tpu.vector_store %arg9[%c0_21, %c0_22], %39 {strides = array<i32>} : memref<128x1xf32, #tpu.memory_space<vmem>>, vector<128x1xf32>,
    } else {
    }
    return
  }
  func.func @transform_0(%arg0: i32, %arg1: memref<1xi32, #tpu.memory_space<smem>>, %arg2: memref<1xi32, #tpu.memory_space<smem>>) -> (i32, i32) {
    %0 = arith.index_cast %arg0 : i32 to index
    %1 = memref.load %arg1[%0] : memref<1xi32, #tpu.memory_space<smem>>
    %c0_i32 = arith.constant 0 : i32
    %c0_i32_0 = arith.constant 0 : i32
    return %1, %c0_i32 : i32, i32
  }
  func.func @transform_1(%arg0: i32, %arg1: memref<1xi32, #tpu.memory_space<smem>>, %arg2: memref<1xi32, #tpu.memory_space<smem>>) -> (i32, i32) {
    %0 = arith.index_cast %arg0 : i32 to index
    %1 = memref.load %arg2[%0] : memref<1xi32, #tpu.memory_space<smem>>
    %c0_i32 = arith.constant 0 : i32
    %c0_i32_0 = arith.constant 0 : i32
    return %c0_i32, %1 : i32, i32
  }
  func.func @transform_2(%arg0: i32, %arg1: memref<1xi32, #tpu.memory_space<smem>>, %arg2: memref<1xi32, #tpu.memory_space<smem>>) -> (i32, i32) {
    %0 = arith.index_cast %arg0 : i32 to index
    %1 = memref.load %arg1[%0] : memref<1xi32, #tpu.memory_space<smem>>
    %c0_i32 = arith.constant 0 : i32
    %c0_i32_0 = arith.constant 0 : i32
    return %1, %c0_i32 : i32, i32
  }
  func.func @transform_3(%arg0: i32, %arg1: memref<1xi32, #tpu.memory_space<smem>>, %arg2: memref<1xi32, #tpu.memory_space<smem>>) -> (i32, i32) {
    %0 = arith.index_cast %arg0 : i32 to index
    %1 = memref.load %arg2[%0] : memref<1xi32, #tpu.memory_space<smem>>
    %c0_i32 = arith.constant 0 : i32
    %c0_i32_0 = arith.constant 0 : i32
    return %1, %c0_i32 : i32, i32
  }
  func.func @transform_4(%arg0: i32, %arg1: memref<1xi32, #tpu.memory_space<smem>>, %arg2: memref<1xi32, #tpu.memory_space<smem>>) -> (i32, i32) {
    %0 = arith.index_cast %arg0 : i32 to index
    %1 = memref.load %arg1[%0] : memref<1xi32, #tpu.memory_space<smem>>
    %c0_i32 = arith.constant 0 : i32
    %c0_i32_0 = arith.constant 0 : i32
    return %1, %c0_i32 : i32, i32
  }
  func.func @transform_5(%arg0: i32, %arg1: memref<1xi32, #tpu.memory_space<smem>>, %arg2: memref<1xi32, #tpu.memory_space<smem>>) -> (i32, i32) {
    %0 = arith.index_cast %arg0 : i32 to index
    %1 = memref.load %arg2[%0] : memref<1xi32, #tpu.memory_space<smem>>
    %c0_i32 = arith.constant 0 : i32
    %c0_i32_0 = arith.constant 0 : i32
    return %c0_i32, %1 : i32, i32
  }
  func.func @transform_6(%arg0: i32, %arg1: memref<1xi32, #tpu.memory_space<smem>>, %arg2: memref<1xi32, #tpu.memory_space<smem>>) -> (i32, i32) {
    %c0_i32 = arith.constant 0 : i32
    %c0_i32_0 = arith.constant 0 : i32
    %c0_i32_1 = arith.constant 0 : i32
    return %c0_i32, %c0_i32_0 : i32, i32
  }
}

</mosaic_0001>

<bundles_post_ra>
// kernel: tpu_custom_call.1
= control target key start
LH: loop header
LB: loop body
LE: loop exit
PB: predicated region body
PF: predicated region fallthrough
CT: control target
= control target key end

     0   :  { %v1579_v0 = vmov 0   ;;  %vm189_vm0 = vcmask 261120   ;;  %vm150_vm1 = vcmask 31744   ;;  %v1580_v63 = vmov 0.0   ;;  %s2056_s1 = inlined_call_operand.<no memory space> [shape: s32[1], index: 1, kind: input, shape index: {}]   ;;  %s2057_s8 = inlined_call_operand.vmem [shape: f32[128,1], index: 8, kind: output, shape index: {}]   ;;  %s2058_s0 = inlined_call_operand.<no memory space> [shape: s32[1], index: 0, kind: input, shape index: {}]   ;;  %s2059_s3 = inlined_call_operand.vmem [shape: f32[32,128], index: 3, kind: input, shape index: {}]   ;;  %s2060_s2 = inlined_call_operand.vmem [shape: f32[128,32], index: 2, kind: input, shape index: {}]   ;;  %s2061_s4 = inlined_call_operand.vmem [shape: f32[128,4], index: 4, kind: input, shape index: {}]   ;;  %s2062_s6 = inlined_call_operand.vmem [shape: f32[128,1], index: 6, kind: input, shape index: {}]   ;;  %s2063_s5 = inlined_call_operand.vmem [shape: f32[128,4], index: 5, kind: input, shape index: {}]   ;;  %s2064_s7 = inlined_call_operand.vmem [shape: f32[1,128], index: 7, kind: input, shape index: {}]  }
   0x1   :  { %p112_p0 = scmp.lt.s32.totalorder %s2056_s1, 0  ;;  %1546 = vset.pattern.permute.xlu1 %v1579_v0  ;;  %1545 = vset.pattern.permute.xlu0 %v1579_v0  ;;  %s1182_s12 = sshll.u32 %s2058_s0, 4  ;;  %151 = vst.msk [vmem:[#allocation2] sm:$0xff] %vm150_vm1, %v1580_v63  ;;  %152 = vst.msk [vmem:[#allocation2 + $0x8] sm:$0xff] %vm150_vm1, %v1580_v63 }
   0x2   :  { %p105_p1 = scmp.lt.s32.totalorder %s1182_s12, 15  ;;  %s1187_s25 = sshll.u32 %s2056_s1, 4  ;;  %153 = vst.msk [vmem:[#allocation2 + $0x10] sm:$0xff] %vm150_vm1, %v1580_v63  ;;  %154 = vst.msk [vmem:[#allocation2 + $0x18] sm:$0xff] %vm150_vm1, %v1580_v63 }
   0x3   :  { %s1632_s9 = scalar_select %p112_p0, %s2056_s1, 0  ;;  %155 = vst.msk [vmem:[#allocation2 + $0x20] sm:$0xff] %vm150_vm1, %v1580_v63  ;;  %156 = vst.msk [vmem:[#allocation2 + $0x28] sm:$0xff] %vm150_vm1, %v1580_v63 }
   0x4   :  { %s2066_s12 = smov (!%p105_p1, %s1182_s12), 15  ;;  %p127_p2 = scmp.lt.s32.totalorder %s1187_s25, 15  ;;  %157 = vst.msk [vmem:[#allocation2 + $0x30] sm:$0xff] %vm150_vm1, %v1580_v63  ;;  %158 = vst.msk [vmem:[#allocation2 + $0x38] sm:$0xff] %vm150_vm1, %v1580_v63 }
   0x5   :  { %s1184_s13 = sshll.u32 %s1632_s9, 3  ;;  %s1183_s17 = sshll.u32 %s2066_s12, 3  ;;  %159 = vst.msk [vmem:[#allocation2 + $0x40] sm:$0xff] %vm150_vm1, %v1580_v63  ;;  %160 = vst.msk [vmem:[#allocation2 + $0x48] sm:$0xff] %vm150_vm1, %v1580_v63 }
   0x6   :  { %s115_s16 = scalar_lea.vmem %s2059_s3, %s1184_s13  ;;  %s1644_s20 = scalar_lea.vmem %s2060_s2, %s1183_s17  ;;  %161 = vst.msk [vmem:[#allocation2 + $0x50] sm:$0xff] %vm150_vm1, %v1580_v63  ;;  %162 = vst.msk [vmem:[#allocation2 + $0x58] sm:$0xff] %vm150_vm1, %v1580_v63 }
   0x7   :  { %v185_v1 = vld [vmem:[%s115_s16] sm:$0xff]  ;;  %v186_v2 = vld [vmem:[%s115_s16 + $0x8] sm:$0xff]  ;;  %v187_v3 = vld [vmem:[%s115_s16 + $0x10] sm:$0xff]  ;;  %s1649_s22 = scalar_lea.vmem %s2061_s4, %s1183_s17  ;;  %s1660_s27 = scalar_lea.vmem %s2062_s6, %s1183_s17  ;;  %163 = vst.msk [vmem:[#allocation2 + $0x60] sm:$0xff] %vm150_vm1, %v1580_v63 }
   0x8   :  { %v1439_v4 = vpack.c.bf16 %v186_v2, %v185_v1  ;;  %v188_v5 = vld [vmem:[%s115_s16 + $0x18] sm:$0xff]  ;;  %v169_v7 = vld [vmem:[%s1644_s20] sm:$0xff]  ;;  %v170_v8 = vld [vmem:[%s1644_s20 + $0x8] sm:$0xff]  ;;  %s2068_s25 = smov (!%p127_p2, %s1187_s25), 15  ;;  %164 = vst.msk [vmem:[#allocation2 + $0x68] sm:$0xff] %vm150_vm1, %v1580_v63  ;;  %s144_s10 = scalar_lea.vmem %s2064_s7, %s1632_s9 }
   0x9   :  { %v1443_v6 = vpack.c.bf16 %v188_v5, %v187_v3  ;;  %1303 = vmatprep.mubr.msk.f32.mxu0 %vm189_vm0, %v169_v7  ;;  %v171_v9 = vld [vmem:[%s1644_s20 + $0x10] sm:$0xff]  ;;  %v407_v10 = vld [vmem:[%s1660_s27 + $0x40] sm:$0xff]  ;;  %v172_v12 = vld [vmem:[%s1644_s20 + $0x18] sm:$0xff]  ;;  %s1188_s4 = sshll.u32 %s2068_s25, 3  ;;  %165 = vst.msk [vmem:[#allocation2 + $0x70] sm:$0xff] %vm150_vm1, %v1580_v63  ;;  %s1208_s11 = sshll.u32 %s2058_s0, 7 }
   0xa   :  { %1440 = vmatprep.subr.bf16.mxu0 %v1439_v4  ;;  %v405_v11 = vld [vmem:[%s1660_s27 + $0x30] sm:$0xff]  ;;  %457 = vperm.xlu1 %1546, %v407_v10   ;;  %v173_v13 = vld [vmem:[%s1644_s20 + $0x20] sm:$0xff]  ;;  %v408_v14 = vld [vmem:[%s1660_s27 + $0x48] sm:$0xff]  ;;  %s1683_s29 = scalar_lea.vmem %s2063_s5, %s1188_s4  ;;  %166 = vst.msk [vmem:[#allocation2 + $0x78] sm:$0xff] %vm150_vm1, %v1580_v63  ;;  %s1835_s12 = scalar_lea.vmem [#allocation2], %s1208_s11 }
   0xb   :  { %1442 = vmatpush3.bf16.msra.mxu0 %v1439_v4  ;;  %447 = vperm.xlu0 %1545, %v405_v11   ;;  %v406_v15 = vld [vmem:[%s1660_s27 + $0x38] sm:$0xff]  ;;  %v174_v16 = vld [vmem:[%s1644_s20 + $0x28] sm:$0xff]  ;;  %v175_v17 = vld [vmem:[%s1644_s20 + $0x30] sm:$0xff]  ;;  %p1209_p3 = scmp.eq.s32.totalorder %s2058_s0, %s2056_s1 }
   0xc   :  { %1444 = vmatprep.subr.bf16.mxu0 %v1443_v6  ;;  %v409_v18 = vld [vmem:[%s1660_s27 + $0x50] sm:$0xff]  ;;  %v399_v19 = vld [vmem:[%s1660_s27] sm:$0xff]  ;;  %v176_v20 = vld [vmem:[%s1644_s20 + $0x38] sm:$0xff]  ;;  %s1210_s18 = sshll.u32 (!%p1209_p3), %s2056_s1, 7 }
   0xd   :  { %v177_v21 = vld [vmem:[%s1644_s20 + $0x40] sm:$0xff]  ;;  %v410_v22 = vld [vmem:[%s1660_s27 + $0x58] sm:$0xff]  ;;  %v400_v23 = vld [vmem:[%s1660_s27 + $0x8] sm:$0xff]  ;;  %s1926_s19 = scalar_lea.vmem (!%p1209_p3), [#allocation2], %s1210_s18 }
   0xe   :  { %462 = vperm.xlu1 %1546, %v408_v14   ;;  %v178_v24 = vld [vmem:[%s1644_s20 + $0x48] sm:$0xff]  ;;  %v600_v25 = vld [vmem:[%s1683_s29] sm:$0xff]  ;;  %v179_v27 = vld [vmem:[%s1644_s20 + $0x50] sm:$0xff] }
   0xf   :  { %1446 = vmatpush3.bf16.msra.mxu0 %v1443_v6  ;;  %452 = vperm.xlu0 %1545, %v406_v15   ;;  %v601_v26 = vld [vmem:[%s1683_s29 + $0x8] sm:$0xff]  ;;  %v411_v28 = vld [vmem:[%s1660_s27 + $0x60] sm:$0xff]  ;;  %v401_v30 = vld [vmem:[%s1660_s27 + $0x10] sm:$0xff] }
  0x10   :  { %v1447_v29 = vpack.c.bf16 %v601_v26, %v600_v25  ;;  %v180_v31 = vld [vmem:[%s1644_s20 + $0x58] sm:$0xff]  ;;  %v181_v32 = vld [vmem:[%s1644_s20 + $0x60] sm:$0xff]  ;;  %v412_v33 = vld [vmem:[%s1660_s27 + $0x68] sm:$0xff] }
  0x11   :  { %v402_v34 = vld [vmem:[%s1660_s27 + $0x18] sm:$0xff]  ;;  %v182_v35 = vld [vmem:[%s1644_s20 + $0x68] sm:$0xff]  ;;  %v602_v36 = vld [vmem:[%s1683_s29 + $0x10] sm:$0xff] }
  0x12   :  { %1304 = vmatmul.mubr.msk.f32.vlgmr.msra.gmra.mrb[0].mxu0 %vm189_vm0, %v170_v8  ;;  %467 = vperm.xlu1 %1546, %v409_v18   ;;  %v603_v37 = vld [vmem:[%s1683_s29 + $0x18] sm:$0xff]  ;;  %v183_v38 = vld [vmem:[%s1644_s20 + $0x70] sm:$0xff]  ;;  %v403_v41 = vld [vmem:[%s1660_s27 + $0x20] sm:$0xff] }
  0x13   :  { %1306 = vmatprep.mubr.msk.f32.mxu0 %vm189_vm0, %v171_v9  ;;  %417 = vperm.xlu0 %1545, %v399_v19   ;;  %v413_v39 = vld [vmem:[%s1660_s27 + $0x70] sm:$0xff]  ;;  %v1451_v40 = vpack.c.bf16 %v603_v37, %v602_v36  ;;  %v184_v42 = vld [vmem:[%s1644_s20 + $0x78] sm:$0xff]  ;;  %v404_v44 = vld [vmem:[%s1660_s27 + $0x28] sm:$0xff] }
  0x14   :  { %1448 = vmatprep.subr.bf16.mxu0 %v1447_v29  ;;  %1511 = vmatprep.subr.bf16.mxu1 %v1447_v29  ;;  %v414_v43 = vld [vmem:[%s1660_s27 + $0x78] sm:$0xff]  ;;  %v604_v45 = vld [vmem:[%s1683_s29 + $0x20] sm:$0xff]  ;;  %v605_v46 = vld [vmem:[%s1683_s29 + $0x28] sm:$0xff] }
  0x15   :  { %1450 = vmatpush3.bf16.msra.mxu0 %v1447_v29  ;;  %1519 = vmatpush3.bf16.msra.mxu1 %v1447_v29  ;;  %v1455_v47 = vpack.c.bf16 %v605_v46, %v604_v45  ;;  %v606_v48 = vld [vmem:[%s1683_s29 + $0x30] sm:$0xff]  ;;  %v607_v49 = vld [vmem:[%s1683_s29 + $0x38] sm:$0xff]  ;;  %v608_v51 = vld [vmem:[%s1683_s29 + $0x40] sm:$0xff] }
  0x16   :  { %1307 = vmatmul.mubr.msk.f32.gmra.mrb[2].mxu0 %vm189_vm0, %v172_v12  ;;  %472 = vperm.xlu1 %1546, %v410_v22   ;;  %v1459_v50 = vpack.c.bf16 %v607_v49, %v606_v48  ;;  %v609_v52 = vld [vmem:[%s1683_s29 + $0x48] sm:$0xff]  ;;  %v610_v54 = vld [vmem:[%s1683_s29 + $0x50] sm:$0xff]  ;;  %v611_v55 = vld [vmem:[%s1683_s29 + $0x58] sm:$0xff] }
  0x17   :  { %1309 = vmatprep.mubr.msk.f32.mxu0 %vm189_vm0, %v173_v13  ;;  %422 = vperm.xlu0 %1545, %v400_v23   ;;  %v1463_v53 = vpack.c.bf16 %v609_v52, %v608_v51  ;;  %v1467_v56 = vpack.c.bf16 %v611_v55, %v610_v54  ;;  %v612_v57 = vld [vmem:[%s1683_s29 + $0x60] sm:$0xff]  ;;  %v613_v58 = vld [vmem:[%s1683_s29 + $0x68] sm:$0xff]  ;;  %v614_v60 = vld [vmem:[%s1683_s29 + $0x70] sm:$0xff] }
  0x18   :  { %1452 = vmatprep.subr.bf16.mxu0 %v1451_v40  ;;  %1512 = vmatprep.subr.bf16.mxu1 %v1451_v40  ;;  %v1471_v59 = vpack.c.bf16 %v613_v58, %v612_v57  ;;  %v615_v61 = vld [vmem:[%s1683_s29 + $0x78] sm:$0xff]  ;;  %v1756_v12 = vld [vmem:[%s144_s10] ss:$0 sm:$0xff] }
  0x19   :  { %1454 = vmatpush3.bf16.msra.mxu0 %v1451_v40  ;;  %1520 = vmatpush3.bf16.msra.mxu1 %v1451_v40  ;;  %v1475_v62 = vpack.c.bf16 %v615_v61, %v614_v60 }
  0x1a   :  { %1310 = vmatmul.mubr.msk.f32.gmra.mrb[4].mxu0 %vm189_vm0, %v174_v16  ;;  %477 = vperm.xlu1 %1546, %v411_v28  }
  0x1b   :  { %1312 = vmatprep.mubr.msk.f32.mxu0 %vm189_vm0, %v175_v17  ;;  %427 = vperm.xlu0 %1545, %v401_v30  }
  0x1c   :  { %1456 = vmatprep.subr.bf16.mxu0 %v1455_v47  ;;  %1513 = vmatprep.subr.bf16.mxu1 %v1455_v47 }
  0x1d   :  { %1458 = vmatpush3.bf16.msra.mxu0 %v1455_v47  ;;  %1521 = vmatpush3.bf16.msra.mxu1 %v1455_v47 }
  0x1e   :  { %1313 = vmatmul.mubr.msk.f32.gmra.mrb[6].mxu0 %vm189_vm0, %v176_v20  ;;  %482 = vperm.xlu1 %1546, %v412_v33  }
  0x1f   :  { %1315 = vmatprep.mubr.msk.f32.mxu0 %vm189_vm0, %v177_v21  ;;  %432 = vperm.xlu0 %1545, %v402_v34  }
  0x20   :  { %1460 = vmatprep.subr.bf16.mxu0 %v1459_v50  ;;  %1514 = vmatprep.subr.bf16.mxu1 %v1459_v50 }
  0x21   :  { %1462 = vmatpush3.bf16.msra.mxu0 %v1459_v50  ;;  %1522 = vmatpush3.bf16.msra.mxu1 %v1459_v50 }
  0x22   :  { %1316 = vmatmul.mubr.msk.f32.gmra.mrb[8].mxu0 %vm189_vm0, %v178_v24  ;;  %487 = vperm.xlu1 %1546, %v413_v39  }
  0x23   :  { %1318 = vmatprep.mubr.msk.f32.mxu0 %vm189_vm0, %v179_v27  ;;  %437 = vperm.xlu0 %1545, %v403_v41  }
  0x24   :  { %1464 = vmatprep.subr.bf16.mxu0 %v1463_v53  ;;  %1515 = vmatprep.subr.bf16.mxu1 %v1463_v53 }
  0x25   :  { %1466 = vmatpush3.bf16.msra.mxu0 %v1463_v53  ;;  %1523 = vmatpush3.bf16.msra.mxu1 %v1463_v53 }
  0x26   :  { %1319 = vmatmul.mubr.msk.f32.gmra.mrb[10].mxu0 %vm189_vm0, %v180_v31  ;;  %492 = vperm.xlu1 %1546, %v414_v43  }
  0x27   :  { %1321 = vmatprep.mubr.msk.f32.mxu0 %vm189_vm0, %v181_v32  ;;  %442 = vperm.xlu0 %1545, %v404_v44  }
  0x28   :  { %1468 = vmatprep.subr.bf16.mxu0 %v1467_v56  ;;  %1516 = vmatprep.subr.bf16.mxu1 %v1467_v56 }
  0x29   :  { %1470 = vmatpush3.bf16.msra.mxu0 %v1467_v56  ;;  %1524 = vmatpush3.bf16.msra.mxu1 %v1467_v56 }
  0x2a   :  { %1322 = vmatmul.mubr.msk.f32.gmra.mrb[12].mxu0 %vm189_vm0, %v182_v35  ;;  %1472 = vmatprep.subr.bf16.mxu0 %v1471_v59 }
  0x2b   :  { %1324 = vmatprep.mubr.msk.f32.mxu0 %vm189_vm0, %v183_v38  ;;  %1517 = vmatprep.subr.bf16.mxu1 %v1471_v59 }
  0x2d   :  { %1474 = vmatpush3.bf16.msra.mxu0 %v1471_v59  ;;  %1525 = vmatpush3.bf16.msra.mxu1 %v1471_v59 }
  0x2e   :  { %1325 = vmatmul.mubr.msk.f32.gmra.mrb[14].mxu0 %vm189_vm0, %v184_v42  ;;  %1476 = vmatprep.subr.bf16.mxu0 %v1475_v62 }
  0x2f   :  { %1518 = vmatprep.subr.bf16.mxu1 %v1475_v62 }
  0x31   :  { %1478 = vmatpush3.bf16.msra.mxu0 %v1475_v62  ;;  %1526 = vmatpush3.bf16.msra.mxu1 %v1475_v62 }
  0x89   :  { %v1746_v4 = vpop.permute.xlu1 %457 }
  0x8a   :  { %v1744_v0 = vpop.permute.xlu0 %447 }
  0x8d   :  { %v1748_v6 = vpop.permute.xlu1 %462 }
  0x8e   :  { %v453_v1 = vpop.permute.xlu0 %452 }
  0x91   :  { %v1754_v8 = vpop.permute.xlu1 %467 }
  0x92   :  { %v418_v2 = vpop.permute.xlu0 %417 }
  0x95   :  { %v1759_v21 = vpop.permute.xlu1 %472 }
  0x96   :  { %v423_v3 = vpop.permute.xlu0 %422 }
  0x99   :  { %v1764_v39 = vpop.permute.xlu1 %477 }
  0x9a   :  { %v428_v5 = vpop.permute.xlu0 %427 }
  0x9d   :  { %v483_v59 = vpop.permute.xlu1 %482 }
  0x9e   :  { %v433_v7 = vpop.permute.xlu0 %432 }
  0xa2   :  { %v438_v15 = vpop.permute.xlu0 %437 }
  0xa6   :  { %v443_v34 = vpop.permute.xlu0 %442 }
  0xe5   :  { %v1305_v9 = vpop.f32.mrb[0].mxu0 }
  0xe6   :  { %v384_v10 = vmul.f32 2.0, %v1305_v9  ;;  %v304_v11 = vpop.f32.mrb[1].mxu0 }
  0xe7   :  { %v383_v13 = vmul.f32 2.0, %v304_v11 }
  0xe8   :  { %v496_v14 = vsub.f32 %v384_v10, %v423_v3 }
  0xe9   :  { %v495_v16 = vsub.f32 %v383_v13, %v418_v2  ;;  %v1308_v17 = vpop.f32.mrb[2].mxu0 }
  0xea   :  { %v519_v18 = vsub.f32 %v496_v14, %v1756_v12  ;;  %v386_v19 = vmul.f32 2.0, %v1308_v17  ;;  %v314_v20 = vpop.f32.mrb[3].mxu0 }
  0xeb   :  { %v518_v22 = vsub.f32 %v495_v16, %v1756_v12  ;;  %v385_v23 = vmul.f32 2.0, %v314_v20 }
  0xec   :  { %v535_v24 = vmin.f32 %v519_v18, 0.0  ;;  %v498_v25 = vsub.f32 %v386_v19, %v433_v7 }
  0xed   :  { %v534_v26 = vmin.f32 %v518_v22, 0.0  ;;  %v497_v27 = vsub.f32 %v385_v23, %v428_v5  ;;  %v1311_v28 = vpop.f32.mrb[4].mxu0 }
  0xee   :  { %v552_v29 = vmul.f32 1.442695, %v535_v24  ;;  %v521_v30 = vsub.f32 %v498_v25, %v1756_v12  ;;  %v388_v31 = vmul.f32 2.0, %v1311_v28  ;;  %v324_v32 = vpop.f32.mrb[5].mxu0 }
  0xef   :  { %v550_v33 = vmul.f32 1.442695, %v534_v26  ;;  %v520_v35 = vsub.f32 %v497_v27, %v1756_v12  ;;  %v387_v36 = vmul.f32 2.0, %v324_v32 }
  0xf0   :  { %v537_v37 = vmin.f32 %v521_v30, 0.0  ;;  %v500_v38 = vsub.f32 %v388_v31, %v443_v34 }
  0xf1   :  { %1547 = vpow2.f32 %v550_v33  ;;  %v536_v40 = vmin.f32 %v520_v35, 0.0  ;;  %v499_v41 = vsub.f32 %v387_v36, %v438_v15  ;;  %v1314_v42 = vpop.f32.mrb[6].mxu0 }
  0xf2   :  { %1549 = vpow2.f32 %v552_v29  ;;  %v556_v43 = vmul.f32 1.442695, %v537_v37  ;;  %v523_v44 = vsub.f32 %v500_v38, %v1756_v12  ;;  %v390_v45 = vmul.f32 2.0, %v1314_v42  ;;  %v334_v46 = vpop.f32.mrb[7].mxu0 }
  0xf3   :  { %v554_v47 = vmul.f32 1.442695, %v536_v40  ;;  %v522_v48 = vsub.f32 %v499_v41, %v1756_v12  ;;  %v389_v49 = vmul.f32 2.0, %v334_v46 }
  0xf4   :  { %v539_v50 = vmin.f32 %v523_v44, 0.0  ;;  %v502_v51 = vsub.f32 %v390_v45, %v453_v1 }
  0xf5   :  { %1551 = vpow2.f32 %v554_v47  ;;  %v538_v52 = vmin.f32 %v522_v48, 0.0  ;;  %v501_v53 = vsub.f32 %v389_v49, %v1744_v0  ;;  %v1317_v54 = vpop.f32.mrb[8].mxu0 }
  0xf6   :  { %1553 = vpow2.f32 %v556_v43  ;;  %v560_v55 = vmul.f32 1.442695, %v539_v50  ;;  %v525_v56 = vsub.f32 %v502_v51, %v1756_v12  ;;  %v392_v57 = vmul.f32 2.0, %v1317_v54  ;;  %v344_v58 = vpop.f32.mrb[9].mxu0 }
  0xf7   :  { %v558_v60 = vmul.f32 1.442695, %v538_v52  ;;  %v391_v61 = vmul.f32 2.0, %v344_v58  ;;  %v524_v62 = vsub.f32 %v501_v53, %v1756_v12 }
  0xf8   :  { %v541_v63 = vmin.f32 %v525_v56, 0.0  ;;  %v504_v2 = vsub.f32 %v392_v57, %v1748_v6 }
  0xf9   :  { %1555 = vpow2.f32 %v558_v60  ;;  %v503_v1 = vsub.f32 %v391_v61, %v1746_v4  ;;  %v1320_v3 = vpop.f32.mrb[10].mxu0  ;;  %v540_v0 = vmin.f32 %v524_v62, 0.0  ;;  %v488_v4 = vpop.permute.xlu1 %487 }
  0xfa   :  { %1557 = vpow2.f32 %v560_v55  ;;  %v564_v5 = vmul.f32 1.442695, %v541_v63  ;;  %v527_v7 = vsub.f32 %v504_v2, %v1756_v12  ;;  %v394_v9 = vmul.f32 2.0, %v1320_v3  ;;  %v354_v10 = vpop.f32.mrb[11].mxu0  ;;  %v584_v3 = vld [vmem:[%s1835_s12] sm:$0xff] }
  0xfb   :  { %v1774_v11 = vpop.eup %1547  ;;  %v526_v13 = vsub.f32 %v503_v1, %v1756_v12  ;;  %v393_v14 = vmul.f32 2.0, %v354_v10  ;;  %v562_v15 = vmul.f32 1.442695, %v540_v0  ;;  %v585_v1 = vld [vmem:[%s1835_s12 + $0x8] sm:$0xff]  ;;  %v587_v10 = vld [vmem:[%s1835_s12 + $0x18] sm:$0xff] }
  0xfc   :  { %v1777_v16 = vpop.eup %1549  ;;  %v543_v6 = vmin.f32 %v527_v7, 0.0  ;;  %v506_v17 = vsub.f32 %v394_v9, %v1759_v21  ;;  %1359 = vmatprep.mubr.f32.mxu0 %v1774_v11  ;;  %814 = vxpose.xlu0.b32.start [1/16] (!%p1209_p3), %v1774_v11, 128  ;;  %v804_v11 = vld [vmem:[%s1649_s22 + $0x30] sm:$0xff] (!%p1209_p3) }
  0xfd   :  { %v542_v18 = vmin.f32 %v526_v13, 0.0  ;;  %v505_v19 = vsub.f32 %v393_v14, %v1754_v8  ;;  %v1323_v20 = vpop.f32.mrb[12].mxu0  ;;  %1360 = vmatmul.mubr.f32.vlgmr.msra.gmra.mrb[16].mxu0 %v1777_v16  ;;  %1559 = vpow2.f32 %v562_v15  ;;  %v493_v40 = vpop.permute.xlu1 %492  ;;  %v586_v13 = vld [vmem:[%s1835_s12 + $0x10] sm:$0xff] }
  0xfe   :  { %1561 = vpow2.f32 %v564_v5  ;;  %v568_v22 = vmul.f32 1.442695, %v543_v6  ;;  %v529_v23 = vsub.f32 %v506_v17, %v1756_v12  ;;  %v396_v24 = vmul.f32 2.0, %v1323_v20  ;;  %v364_v25 = vpop.f32.mrb[13].mxu0 }
  0xff   :  { %v1784_v26 = vpop.eup %1551  ;;  %v566_v27 = vmul.f32 1.442695, %v542_v18  ;;  %v528_v21 = vsub.f32 %v505_v19, %v1756_v12  ;;  %v395_v28 = vmul.f32 2.0, %v364_v25  ;;  %v588_v18 = vld [vmem:[%s1835_s12 + $0x20] sm:$0xff]  ;;  %v590_v25 = vld [vmem:[%s1835_s12 + $0x30] sm:$0xff] }
 0x100   :  { %v1787_v29 = vpop.eup %1553  ;;  %v545_v30 = vmin.f32 %v529_v23, 0.0  ;;  %v508_v8 = vsub.f32 %v396_v24, %v483_v59  ;;  %1362 = vmatprep.mubr.f32.mxu0 %v1784_v26  ;;  %v591_v24 = vld [vmem:[%s1835_s12 + $0x38] sm:$0xff]  ;;  %815 = vxpose.xlu0.b32.cont [2/16] (!%p1209_p3), %v1777_v16, 128 }
 0x101   :  { %1563 = vpow2.f32 %v566_v27  ;;  %v544_v31 = vmin.f32 %v528_v21, 0.0  ;;  %v507_v32 = vsub.f32 %v395_v28, %v1764_v39  ;;  %v1326_v33 = vpop.f32.mrb[14].mxu0  ;;  %1363 = vmatmul.mubr.f32.gmra.mrb[18].mxu0 %v1787_v29 }
 0x102   :  { %1565 = vpow2.f32 %v568_v22  ;;  %v572_v34 = vmul.f32 1.442695, %v545_v30  ;;  %v531_v35 = vsub.f32 %v508_v8, %v1756_v12  ;;  %v398_v36 = vmul.f32 2.0, %v1326_v33  ;;  %v374_v37 = vpop.f32.mrb[15].mxu0  ;;  %v593_v8 = vld [vmem:[%s1835_s12 + $0x48] sm:$0xff] }
 0x103   :  { %v1793_v38 = vpop.eup %1555  ;;  %v570_v41 = vmul.f32 1.442695, %v544_v31  ;;  %v530_v42 = vsub.f32 %v507_v32, %v1756_v12  ;;  %v397_v43 = vmul.f32 2.0, %v374_v37  ;;  %v592_v31 = vld [vmem:[%s1835_s12 + $0x40] sm:$0xff]  ;;  %v594_v37 = vld [vmem:[%s1835_s12 + $0x50] sm:$0xff] }
 0x104   :  { %v1796_v44 = vpop.eup %1557  ;;  %v547_v45 = vmin.f32 %v531_v35, 0.0  ;;  %v510_v39 = vsub.f32 %v398_v36, %v493_v40  ;;  %1365 = vmatprep.mubr.f32.mxu0 %v1793_v38  ;;  %v595_v36 = vld [vmem:[%s1835_s12 + $0x58] sm:$0xff]  ;;  %816 = vxpose.xlu0.b32.cont [3/16] (!%p1209_p3), %v1784_v26, 128 }
 0x105   :  { %1567 = vpow2.f32 %v570_v41  ;;  %v546_v46 = vmin.f32 %v530_v42, 0.0  ;;  %v509_v47 = vsub.f32 %v397_v43, %v488_v4  ;;  %1366 = vmatmul.mubr.f32.gmra.mrb[20].mxu0 %v1796_v44  ;;  %v589_v4 = vld [vmem:[%s1835_s12 + $0x28] sm:$0xff] }
 0x106   :  { %1569 = vpow2.f32 %v572_v34  ;;  %v576_v48 = vmul.f32 1.442695, %v547_v45  ;;  %v533_v49 = vsub.f32 %v510_v39, %v1756_v12  ;;  %v597_v45 = vld [vmem:[%s1835_s12 + $0x68] sm:$0xff]  ;;  %v596_v39 = vld [vmem:[%s1835_s12 + $0x60] sm:$0xff] }
 0x107   :  { %v1801_v50 = vpop.eup %1559  ;;  %v574_v51 = vmul.f32 1.442695, %v546_v46  ;;  %v532_v52 = vsub.f32 %v509_v47, %v1756_v12 }
 0x108   :  { %v1804_v53 = vpop.eup %1561  ;;  %v549_v54 = vmin.f32 %v533_v49, 0.0  ;;  %1368 = vmatprep.mubr.f32.mxu1 %v1801_v50  ;;  %817 = vxpose.xlu0.b32.cont [4/16] (!%p1209_p3), %v1787_v29, 128 }
 0x109   :  { %1571 = vpow2.f32 %v574_v51  ;;  %v548_v55 = vmin.f32 %v532_v52, 0.0  ;;  %1369 = vmatmul.mubr.f32.vlgmr.msra.gmra.mrb[0].mxu1 %v1804_v53  ;;  %v599_v51 = vld [vmem:[%s1835_s12 + $0x78] sm:$0xff]  ;;  %v598_v52 = vld [vmem:[%s1835_s12 + $0x70] sm:$0xff] }
 0x10a   :  { %1573 = vpow2.f32 %v576_v48  ;;  %v580_v56 = vmul.f32 1.442695, %v549_v54 }
 0x10b   :  { %v1808_v57 = vpop.eup %1563  ;;  %v578_v58 = vmul.f32 1.442695, %v548_v55 }
 0x10c   :  { %v1810_v59 = vpop.eup %1565  ;;  %1371 = vmatprep.mubr.f32.mxu1 %v1808_v57  ;;  %818 = vxpose.xlu0.b32.cont [5/16] (!%p1209_p3), %v1793_v38, 128 }
 0x10d   :  { %1575 = vpow2.f32 %v578_v58  ;;  %1372 = vmatmul.mubr.f32.gmra.mrb[2].mxu1 %v1810_v59 }
 0x10e   :  { %1577 = vpow2.f32 %v580_v56 }
 0x10f   :  { %v1814_v12 = vpop.eup %1567 }
 0x110   :  { %v1816_v60 = vpop.eup %1569  ;;  %1374 = vmatprep.mubr.f32.mxu1 %v1814_v12  ;;  %819 = vxpose.xlu0.b32.cont [6/16] (!%p1209_p3), %v1796_v44, 128 }
 0x111   :  { %1375 = vmatmul.mubr.f32.gmra.mrb[4].mxu1 %v1816_v60 }
 0x113   :  { %v1820_v61 = vpop.eup %1571 }
 0x114   :  { %v1822_v62 = vpop.eup %1573  ;;  %1377 = vmatprep.mubr.f32.mxu1 %v1820_v61  ;;  %820 = vxpose.xlu0.b32.cont [7/16] (!%p1209_p3), %v1801_v50, 128 }
 0x115   :  { %1378 = vmatmul.mubr.f32.gmra.mrb[6].mxu1 %v1822_v62 }
 0x117   :  { %v1826_v63 = vpop.eup %1575 }
 0x118   :  { %v1828_v2 = vpop.eup %1577  ;;  %1380 = vmatprep.mubr.f32.mxu1 %v1826_v63  ;;  %821 = vxpose.xlu0.b32.cont [8/16] (!%p1209_p3), %v1804_v53, 128 }
 0x119   :  { %1381 = vmatmul.mubr.f32.gmra.mrb[8].mxu1 %v1828_v2 }
 0x11c   :  { %822 = vxpose.xlu0.b32.cont [9/16] (!%p1209_p3), %v1808_v57, 128 }
 0x120   :  { %823 = vxpose.xlu0.b32.cont [10/16] (!%p1209_p3), %v1810_v59, 128 }
 0x124   :  { %824 = vxpose.xlu0.b32.cont [11/16] (!%p1209_p3), %v1814_v12, 128 }
 0x128   :  { %825 = vxpose.xlu0.b32.cont [12/16] (!%p1209_p3), %v1816_v60, 128 }
 0x12c   :  { %826 = vxpose.xlu0.b32.cont [13/16] (!%p1209_p3), %v1820_v61, 128 }
 0x130   :  { %827 = vxpose.xlu0.b32.cont [14/16] (!%p1209_p3), %v1822_v62, 128 }
 0x134   :  { %828 = vxpose.xlu0.b32.cont [15/16] (!%p1209_p3), %v1826_v63, 128 }
 0x138   :  { %829 = vxpose.xlu0.b32.end [16/16] (!%p1209_p3), %v1828_v2, 128 }
 0x17c   :  { %v830_v44 = vpop.trf.xlu0 (!%p1209_p3) }
 0x17d   :  { %1415 = vmatprep.mubr.f32.mxu0 (!%p1209_p3), %v830_v44 }
 0x180   :  { %v831_v50 = vpop.trf.xlu0 (!%p1209_p3) }
 0x184   :  { %v832_v53 = vpop.trf.xlu0 (!%p1209_p3) }
 0x188   :  { %v833_v57 = vpop.trf.xlu0 (!%p1209_p3) }
 0x18c   :  { %v834_v59 = vpop.trf.xlu0 (!%p1209_p3) }
 0x190   :  { %v835_v12 = vpop.trf.xlu0 (!%p1209_p3) }
 0x194   :  { %v836_v60 = vpop.trf.xlu0 (!%p1209_p3) }
 0x198   :  { %v837_v61 = vpop.trf.xlu0 (!%p1209_p3) }
 0x19c   :  { %v838_v62 = vpop.trf.xlu0 (!%p1209_p3) }
 0x19d   :  { %1427 = vmatprep.mubr.f32.mxu1 (!%p1209_p3), %v838_v62 }
 0x1a0   :  { %v839_v63 = vpop.trf.xlu0 (!%p1209_p3) }
 0x1a4   :  { %v840_v2 = vpop.trf.xlu0 (!%p1209_p3) }
 0x1d0   :  { %v1361_v0 = vpop.f32.mrb[16].mxu0 }
 0x1d1   :  { %v762_v5 = vadd.f32 %v1361_v0, %v585_v1  ;;  %v682_v7 = vpop.f32.mrb[17].mxu0  ;;  %v798_v1 = vld [vmem:[%s1649_s22] sm:$0xff] (!%p1209_p3)  ;;  %v800_v0 = vld [vmem:[%s1649_s22 + $0x10] sm:$0xff] (!%p1209_p3) }
 0x1d2   :  { %v761_v9 = vadd.f32 %v682_v7, %v584_v3  ;;  %v799_v3 = vld [vmem:[%s1649_s22 + $0x8] sm:$0xff] (!%p1209_p3)  ;;  %v801_v7 = vld [vmem:[%s1649_s22 + $0x18] sm:$0xff] (!%p1209_p3) }
 0x1d3   :  { %779 = vst.msk [vmem:[%s1835_s12 + $0x8] sm:$0xff] %vm150_vm1, %v762_v5  ;;  %v1479_v5 = vpack.c.bf16 (!%p1209_p3), %v799_v3, %v798_v1 }
 0x1d4   :  { %778 = vst.msk [vmem:[%s1835_s12] sm:$0xff] %vm150_vm1, %v761_v9  ;;  %v1364_v14 = vpop.f32.mrb[18].mxu0  ;;  %v1483_v9 = vpack.c.bf16 (!%p1209_p3), %v801_v7, %v800_v0 }
 0x1d5   :  { %v764_v15 = vadd.f32 %v1364_v14, %v587_v10  ;;  %v692_v6 = vpop.f32.mrb[19].mxu0  ;;  %v802_v10 = vld [vmem:[%s1649_s22 + $0x20] sm:$0xff] (!%p1209_p3)  ;;  %1480 = vmatprep.subr.bf16.mxu0 (!%p1209_p3), %v1479_v5  ;;  %1527 = vmatprep.subr.bf16.mxu1 (!%p1209_p3), %v1479_v5 }
 0x1d6   :  { %v763_v17 = vadd.f32 %v692_v6, %v586_v13  ;;  %v803_v13 = vld [vmem:[%s1649_s22 + $0x28] sm:$0xff] (!%p1209_p3)  ;;  %1482 = vmatpush3.bf16.msra.mxu0 (!%p1209_p3), %v1479_v5  ;;  %1535 = vmatpush3.bf16.msra.mxu1 (!%p1209_p3), %v1479_v5 }
 0x1d7   :  { %781 = vst.msk [vmem:[%s1835_s12 + $0x18] sm:$0xff] %vm150_vm1, %v764_v15  ;;  %1484 = vmatprep.subr.bf16.mxu0 (!%p1209_p3), %v1483_v9  ;;  %v1487_v14 = vpack.c.bf16 (!%p1209_p3), %v803_v13, %v802_v10  ;;  %v805_v15 = vld [vmem:[%s1649_s22 + $0x38] sm:$0xff] (!%p1209_p3)  ;;  %1528 = vmatprep.subr.bf16.mxu1 (!%p1209_p3), %v1483_v9 }
 0x1d8   :  { %780 = vst.msk [vmem:[%s1835_s12 + $0x10] sm:$0xff] %vm150_vm1, %v763_v17  ;;  %v1367_v19 = vpop.f32.mrb[20].mxu0  ;;  %v1491_v6 = vpack.c.bf16 (!%p1209_p3), %v805_v15, %v804_v11  ;;  %v806_v17 = vld [vmem:[%s1649_s22 + $0x40] sm:$0xff] (!%p1209_p3) }
 0x1d9   :  { %v766_v20 = vadd.f32 %v1367_v19, %v589_v4  ;;  %v702_v22 = vpop.f32.mrb[21].mxu0  ;;  %v807_v4 = vld [vmem:[%s1649_s22 + $0x48] sm:$0xff] (!%p1209_p3)  ;;  %v809_v19 = vld [vmem:[%s1649_s22 + $0x58] sm:$0xff] (!%p1209_p3) }
 0x1da   :  { %v765_v23 = vadd.f32 %v702_v22, %v588_v18  ;;  %1486 = vmatpush3.bf16.msra.mxu0 (!%p1209_p3), %v1483_v9  ;;  %1536 = vmatpush3.bf16.msra.mxu1 (!%p1209_p3), %v1483_v9  ;;  %v1495_v16 = vpack.c.bf16 (!%p1209_p3), %v807_v4, %v806_v17  ;;  %v808_v18 = vld [vmem:[%s1649_s22 + $0x50] sm:$0xff] (!%p1209_p3)  ;;  %v811_v22 = vld [vmem:[%s1649_s22 + $0x68] sm:$0xff] (!%p1209_p3) }
 0x1db   :  { %783 = vst.msk [vmem:[%s1835_s12 + $0x28] sm:$0xff] %vm150_vm1, %v766_v20  ;;  %1488 = vmatprep.subr.bf16.mxu0 (!%p1209_p3), %v1487_v14  ;;  %1529 = vmatprep.subr.bf16.mxu1 (!%p1209_p3), %v1487_v14  ;;  %v1499_v26 = vpack.c.bf16 (!%p1209_p3), %v809_v19, %v808_v18  ;;  %v810_v20 = vld [vmem:[%s1649_s22 + $0x60] sm:$0xff] (!%p1209_p3) }
 0x1dc   :  { %782 = vst.msk [vmem:[%s1835_s12 + $0x20] sm:$0xff] %vm150_vm1, %v765_v23  ;;  %v1370_v27 = vpop.f32.mrb[0].mxu1  ;;  %v1503_v29 = vpack.c.bf16 (!%p1209_p3), %v811_v22, %v810_v20  ;;  %v812_v23 = vld [vmem:[%s1649_s22 + $0x70] sm:$0xff] (!%p1209_p3) }
 0x1dd   :  { %v768_v21 = vadd.f32 %v1370_v27, %v591_v24  ;;  %v712_v28 = vpop.f32.mrb[1].mxu1  ;;  %v813_v24 = vld [vmem:[%s1649_s22 + $0x78] sm:$0xff] (!%p1209_p3) }
 0x1de   :  { %v767_v30 = vadd.f32 %v712_v28, %v590_v25  ;;  %1490 = vmatpush3.bf16.msra.mxu0 (!%p1209_p3), %v1487_v14  ;;  %1537 = vmatpush3.bf16.msra.mxu1 (!%p1209_p3), %v1487_v14  ;;  %v1507_v38 = vpack.c.bf16 (!%p1209_p3), %v813_v24, %v812_v23  ;;  %v841_v25 = vpop.trf.xlu0 (!%p1209_p3) }
 0x1df   :  { %785 = vst.msk [vmem:[%s1835_s12 + $0x38] sm:$0xff] %vm150_vm1, %v768_v21  ;;  %1492 = vmatprep.subr.bf16.mxu0 (!%p1209_p3), %v1491_v6  ;;  %1530 = vmatprep.subr.bf16.mxu1 (!%p1209_p3), %v1491_v6 }
 0x1e0   :  { %784 = vst.msk [vmem:[%s1835_s12 + $0x30] sm:$0xff] %vm150_vm1, %v767_v30  ;;  %v1373_v32 = vpop.f32.mrb[2].mxu1 }
 0x1e1   :  { %v770_v33 = vadd.f32 %v1373_v32, %v593_v8  ;;  %v722_v34 = vpop.f32.mrb[3].mxu1 }
 0x1e2   :  { %v769_v35 = vadd.f32 %v722_v34, %v592_v31  ;;  %1494 = vmatpush3.bf16.msra.mxu0 (!%p1209_p3), %v1491_v6  ;;  %1538 = vmatpush3.bf16.msra.mxu1 (!%p1209_p3), %v1491_v6  ;;  %v842_v27 = vpop.trf.xlu0 (!%p1209_p3) }
 0x1e3   :  { %787 = vst.msk [vmem:[%s1835_s12 + $0x48] sm:$0xff] %vm150_vm1, %v770_v33  ;;  %1496 = vmatprep.subr.bf16.mxu0 (!%p1209_p3), %v1495_v16  ;;  %1531 = vmatprep.subr.bf16.mxu1 (!%p1209_p3), %v1495_v16 }
 0x1e4   :  { %786 = vst.msk [vmem:[%s1835_s12 + $0x40] sm:$0xff] %vm150_vm1, %v769_v35  ;;  %v1376_v40 = vpop.f32.mrb[4].mxu1 }
 0x1e5   :  { %v772_v41 = vadd.f32 %v1376_v40, %v595_v36  ;;  %v732_v42 = vpop.f32.mrb[5].mxu1 }
 0x1e6   :  { %v771_v43 = vadd.f32 %v732_v42, %v594_v37  ;;  %1498 = vmatpush3.bf16.msra.mxu0 (!%p1209_p3), %v1495_v16  ;;  %1539 = vmatpush3.bf16.msra.mxu1 (!%p1209_p3), %v1495_v16  ;;  %v843_v21 = vpop.trf.xlu0 (!%p1209_p3) }
 0x1e7   :  { %789 = vst.msk [vmem:[%s1835_s12 + $0x58] sm:$0xff] %vm150_vm1, %v772_v41  ;;  %1500 = vmatprep.subr.bf16.mxu0 (!%p1209_p3), %v1499_v26  ;;  %1532 = vmatprep.subr.bf16.mxu1 (!%p1209_p3), %v1499_v26 }
 0x1e8   :  { %788 = vst.msk [vmem:[%s1835_s12 + $0x50] sm:$0xff] %vm150_vm1, %v771_v43  ;;  %v1379_v46 = vpop.f32.mrb[6].mxu1 }
 0x1e9   :  { %v774_v47 = vadd.f32 %v1379_v46, %v597_v45  ;;  %v742_v48 = vpop.f32.mrb[7].mxu1 }
 0x1ea   :  { %v773_v49 = vadd.f32 %v742_v48, %v596_v39  ;;  %797 = sbr.rel (%p1209_p3) target bundleno = 729 (0x2d9), region = 33  ;;  %1502 = vmatpush3.bf16.msra.mxu0 (!%p1209_p3), %v1499_v26  ;;  %1540 = vmatpush3.bf16.msra.mxu1 (!%p1209_p3), %v1499_v26  ;;  %v844_v28 = vpop.trf.xlu0 (!%p1209_p3) }
 0x1eb   :  { %791 = vst.msk [vmem:[%s1835_s12 + $0x68] sm:$0xff] %vm150_vm1, %v774_v47  ;;  %1504 = vmatprep.subr.bf16.mxu0 (!%p1209_p3), %v1503_v29  ;;  %1533 = vmatprep.subr.bf16.mxu1 (!%p1209_p3), %v1503_v29 }
 0x1ec   :  { %790 = vst.msk [vmem:[%s1835_s12 + $0x60] sm:$0xff] %vm150_vm1, %v773_v49  ;;  %v1382_v54 = vpop.f32.mrb[8].mxu1 }
 0x1ed   :  { %v776_v55 = vadd.f32 %v1382_v54, %v599_v51  ;;  %v752_v56 = vpop.f32.mrb[9].mxu1 }
 0x1ee   :  { %v775_v58 = vadd.f32 %v752_v56, %v598_v52  ;;  %1506 = vmatpush3.bf16.msra.mxu0 (!%p1209_p3), %v1503_v29  ;;  %1541 = vmatpush3.bf16.msra.mxu1 (!%p1209_p3), %v1503_v29  ;;  %v845_v30 = vpop.trf.xlu0 (!%p1209_p3) }
 0x1ef   :  { %793 = vst.msk [vmem:[%s1835_s12 + $0x78] sm:$0xff] %vm150_vm1, %v776_v55  ;;  %1508 = vmatprep.subr.bf16.mxu0 (!%p1209_p3), %v1507_v38  ;;  %1534 = vmatprep.subr.bf16.mxu1 (!%p1209_p3), %v1507_v38 }
 0x1f0   :  { %792 = vst.msk [vmem:[%s1835_s12 + $0x70] sm:$0xff] %vm150_vm1, %v775_v58 }
 0x1f2   :  { %1510 = vmatpush3.bf16.msra.mxu0 %v1507_v38  ;;  %1542 = vmatpush3.bf16.msra.mxu1 %v1507_v38 }
 0x1f5   :  { %1416 = vmatmul.mubr.f32.vlgmr.msra.gmra.mrb[0].mxu0 %v831_v50  ;;  %1428 = vmatmul.mubr.f32.vlgmr.msra.gmra.mrb[0].mxu1 %v839_v63 }
 0x1f6   :  { %1418 = vmatprep.mubr.f32.mxu0 %v832_v53  ;;  %1430 = vmatprep.mubr.f32.mxu1 %v840_v2 }
 0x1f7   :  { %v994_v8 = vld [vmem:[%s1926_s19 + $0x8] sm:$0xff]  ;;  %v993_v31 = vld [vmem:[%s1926_s19] sm:$0xff]  ;;  %v996_v36 = vld [vmem:[%s1926_s19 + $0x18] sm:$0xff] }
 0x1f8   :  { %v995_v37 = vld [vmem:[%s1926_s19 + $0x10] sm:$0xff]  ;;  %v998_v45 = vld [vmem:[%s1926_s19 + $0x28] sm:$0xff]  ;;  %v997_v39 = vld [vmem:[%s1926_s19 + $0x20] sm:$0xff] }
 0x1f9   :  { %1419 = vmatmul.mubr.f32.gmra.mrb[2].mxu0 %v833_v57  ;;  %1431 = vmatmul.mubr.f32.gmra.mrb[2].mxu1 %v841_v25  ;;  %v1000_v51 = vld [vmem:[%s1926_s19 + $0x38] sm:$0xff]  ;;  %v999_v52 = vld [vmem:[%s1926_s19 + $0x30] sm:$0xff]  ;;  %v1002_v1 = vld [vmem:[%s1926_s19 + $0x48] sm:$0xff] }
 0x1fa   :  { %1421 = vmatprep.mubr.f32.mxu0 %v834_v59  ;;  %1433 = vmatprep.mubr.f32.mxu1 %v842_v27  ;;  %v1001_v3 = vld [vmem:[%s1926_s19 + $0x40] sm:$0xff]  ;;  %v1004_v10 = vld [vmem:[%s1926_s19 + $0x58] sm:$0xff]  ;;  %v1003_v13 = vld [vmem:[%s1926_s19 + $0x50] sm:$0xff] }
 0x1fb   :  { %v1006_v17 = vld [vmem:[%s1926_s19 + $0x68] sm:$0xff]  ;;  %v1005_v4 = vld [vmem:[%s1926_s19 + $0x60] sm:$0xff]  ;;  %v1008_v20 = vld [vmem:[%s1926_s19 + $0x78] sm:$0xff] }
 0x1fc   :  { %v1007_v22 = vld [vmem:[%s1926_s19 + $0x70] sm:$0xff] }
 0x1fd   :  { %1422 = vmatmul.mubr.f32.gmra.mrb[4].mxu0 %v835_v12  ;;  %1434 = vmatmul.mubr.f32.gmra.mrb[4].mxu1 %v843_v21 }
 0x1fe   :  { %1424 = vmatprep.mubr.f32.mxu0 %v836_v60  ;;  %1436 = vmatprep.mubr.f32.mxu1 %v844_v28 }
 0x201   :  { %1425 = vmatmul.mubr.f32.gmra.mrb[6].mxu0 %v837_v61  ;;  %1437 = vmatmul.mubr.f32.gmra.mrb[6].mxu1 %v845_v30 }
 0x2c8   :  { %v1417_v32 = vpop.f32.mrb[0].mxu0  ;;  %v1429_v0 = vpop.f32.mrb[0].mxu1 }
 0x2c9   :  { %v1010_v33 = vadd.f32 %v1417_v32, %v994_v8  ;;  %v912_v34 = vpop.f32.mrb[1].mxu0  ;;  %v1018_v5 = vadd.f32 %v1429_v0, %v1002_v1  ;;  %v952_v7 = vpop.f32.mrb[1].mxu1 }
 0x2ca   :  { %v1009_v35 = vadd.f32 %v993_v31, %v912_v34  ;;  %v1017_v9 = vadd.f32 %v1001_v3, %v952_v7 }
 0x2cb   :  { %1026 = vst.msk [vmem:[%s1926_s19 + $0x8] sm:$0xff] %vm150_vm1, %v1010_v33  ;;  %1034 = vst.msk [vmem:[%s1926_s19 + $0x48] sm:$0xff] %vm150_vm1, %v1018_v5 }
 0x2cc   :  { %1025 = vst.msk [vmem:[%s1926_s19] sm:$0xff] %vm150_vm1, %v1009_v35  ;;  %v1420_v40 = vpop.f32.mrb[2].mxu0  ;;  %1033 = vst.msk [vmem:[%s1926_s19 + $0x40] sm:$0xff] %vm150_vm1, %v1017_v9  ;;  %v1432_v14 = vpop.f32.mrb[2].mxu1 }
 0x2cd   :  { %v1012_v41 = vadd.f32 %v1420_v40, %v996_v36  ;;  %v922_v42 = vpop.f32.mrb[3].mxu0  ;;  %v1020_v11 = vadd.f32 %v1432_v14, %v1004_v10  ;;  %v962_v15 = vpop.f32.mrb[3].mxu1 }
 0x2ce   :  { %v1011_v43 = vadd.f32 %v995_v37, %v922_v42  ;;  %v1019_v6 = vadd.f32 %v1003_v13, %v962_v15 }
 0x2cf   :  { %1028 = vst.msk [vmem:[%s1926_s19 + $0x18] sm:$0xff] %vm150_vm1, %v1012_v41  ;;  %1036 = vst.msk [vmem:[%s1926_s19 + $0x58] sm:$0xff] %vm150_vm1, %v1020_v11 }
 0x2d0   :  { %1027 = vst.msk [vmem:[%s1926_s19 + $0x10] sm:$0xff] %vm150_vm1, %v1011_v43  ;;  %v1423_v46 = vpop.f32.mrb[4].mxu0  ;;  %1035 = vst.msk [vmem:[%s1926_s19 + $0x50] sm:$0xff] %vm150_vm1, %v1019_v6  ;;  %v1435_v16 = vpop.f32.mrb[4].mxu1 }
 0x2d1   :  { %v1014_v47 = vadd.f32 %v1423_v46, %v998_v45  ;;  %v932_v48 = vpop.f32.mrb[5].mxu0  ;;  %v1022_v18 = vadd.f32 %v1435_v16, %v1006_v17  ;;  %v972_v19 = vpop.f32.mrb[5].mxu1 }
 0x2d2   :  { %v1013_v49 = vadd.f32 %v997_v39, %v932_v48  ;;  %v1021_v26 = vadd.f32 %v1005_v4, %v972_v19 }
 0x2d3   :  { %1030 = vst.msk [vmem:[%s1926_s19 + $0x28] sm:$0xff] %vm150_vm1, %v1014_v47  ;;  %1038 = vst.msk [vmem:[%s1926_s19 + $0x68] sm:$0xff] %vm150_vm1, %v1022_v18 }
 0x2d4   :  { %1029 = vst.msk [vmem:[%s1926_s19 + $0x20] sm:$0xff] %vm150_vm1, %v1013_v49  ;;  %v1426_v54 = vpop.f32.mrb[6].mxu0  ;;  %1037 = vst.msk [vmem:[%s1926_s19 + $0x60] sm:$0xff] %vm150_vm1, %v1021_v26  ;;  %v1438_v29 = vpop.f32.mrb[6].mxu1 }
 0x2d5   :  { %v1016_v55 = vadd.f32 %v1426_v54, %v1000_v51  ;;  %v942_v56 = vpop.f32.mrb[7].mxu0  ;;  %v1024_v23 = vadd.f32 %v1438_v29, %v1008_v20  ;;  %v982_v24 = vpop.f32.mrb[7].mxu1 }
 0x2d6   :  { %v1015_v58 = vadd.f32 %v999_v52, %v942_v56  ;;  %v1023_v38 = vadd.f32 %v1007_v22, %v982_v24 }
 0x2d7   :  { %1032 = vst.msk [vmem:[%s1926_s19 + $0x38] sm:$0xff] %vm150_vm1, %v1016_v55  ;;  %1040 = vst.msk [vmem:[%s1926_s19 + $0x78] sm:$0xff] %vm150_vm1, %v1024_v23 }
 0x2d8   :  { %1031 = vst.msk [vmem:[%s1926_s19 + $0x30] sm:$0xff] %vm150_vm1, %v1015_v58  ;;  %1039 = vst.msk [vmem:[%s1926_s19 + $0x70] sm:$0xff] %vm150_vm1, %v1023_v38 }
 0x2d9 PF:  { %vm1124_vm2 = vcmask 7168  }
 0x2df   :  { %v1046_v44 = vld [vmem:[#allocation2 + $0x10] sm:$0xff]  ;;  %v1044_v50 = vld [vmem:[#allocation2] sm:$0xff]  ;;  %v1047_v53 = vld [vmem:[#allocation2 + $0x18] sm:$0xff] }
 0x2e0   :  { %v1062_v57 = vmul.f32 %v1046_v44, %v1046_v44  ;;  %v1060_v59 = vmul.f32 %v1044_v50, %v1044_v50  ;;  %v1063_v12 = vmul.f32 %v1047_v53, %v1047_v53  ;;  %v1045_v60 = vld [vmem:[#allocation2 + $0x8] sm:$0xff]  ;;  %v1048_v63 = vld [vmem:[#allocation2 + $0x20] sm:$0xff]  ;;  %v1051_v8 = vld [vmem:[#allocation2 + $0x38] sm:$0xff] }
 0x2e1   :  { %v1061_v61 = vmul.f32 %v1045_v60, %v1045_v60  ;;  %v1049_v62 = vld [vmem:[#allocation2 + $0x28] sm:$0xff]  ;;  %v1064_v30 = vmul.f32 %v1048_v63, %v1048_v63  ;;  %v1050_v31 = vld [vmem:[#allocation2 + $0x30] sm:$0xff]  ;;  %v1067_v34 = vmul.f32 %v1051_v8, %v1051_v8  ;;  %v1052_v37 = vld [vmem:[#allocation2 + $0x40] sm:$0xff] }
 0x2e2   :  { %v1082_v2 = vsel %vm150_vm1, %v1062_v57, 0.0  ;;  %v1076_v25 = vsel %vm150_vm1, %v1060_v59, 0.0  ;;  %v1085_v27 = vsel %vm150_vm1, %v1063_v12, 0.0  ;;  %v1065_v28 = vmul.f32 %v1049_v62, %v1049_v62  ;;  %v1053_v36 = vld [vmem:[#allocation2 + $0x48] sm:$0xff]  ;;  %v1055_v45 = vld [vmem:[#allocation2 + $0x58] sm:$0xff]  ;;  %v1054_v39 = vld [vmem:[#allocation2 + $0x50] sm:$0xff] }
 0x2e3   :  { %1083 = vadd.xlane.f32.xlu1 %v1082_v2  ;;  %1077 = vadd.xlane.f32.xlu0 %v1076_v25  ;;  %v1079_v21 = vsel %vm150_vm1, %v1061_v61, 0.0  ;;  %v1088_v33 = vsel %vm150_vm1, %v1064_v30, 0.0  ;;  %v1066_v35 = vmul.f32 %v1050_v31, %v1050_v31  ;;  %v1097_v40 = vsel %vm150_vm1, %v1067_v34, 0.0  ;;  %v1057_v51 = vld [vmem:[#allocation2 + $0x68] sm:$0xff]  ;;  %v1056_v52 = vld [vmem:[#allocation2 + $0x60] sm:$0xff]  ;;  %v1059_v1 = vld [vmem:[#allocation2 + $0x78] sm:$0xff] }
 0x2e4   :  { %v1091_v32 = vsel %vm150_vm1, %v1065_v28, 0.0  ;;  %v1069_v42 = vmul.f32 %v1053_v36, %v1053_v36  ;;  %v1068_v43 = vmul.f32 %v1052_v37, %v1052_v37  ;;  %v1071_v48 = vmul.f32 %v1055_v45, %v1055_v45  ;;  %v1058_v3 = vld [vmem:[#allocation2 + $0x70] sm:$0xff] }
 0x2e5   :  { %v1094_v41 = vsel %vm150_vm1, %v1066_v35, 0.0  ;;  %v1070_v49 = vmul.f32 %v1054_v39, %v1054_v39  ;;  %v1073_v56 = vmul.f32 %v1057_v51, %v1057_v51  ;;  %v1072_v58 = vmul.f32 %v1056_v52, %v1056_v52 }
 0x2e6   :  { %v1103_v46 = vsel %vm150_vm1, %v1069_v42, 0.0  ;;  %v1100_v47 = vsel %vm150_vm1, %v1068_v43, 0.0  ;;  %v1109_v54 = vsel %vm150_vm1, %v1071_v48, 0.0  ;;  %v1075_v7 = vmul.f32 %v1059_v1, %v1059_v1 }
 0x2e7   :  { %1086 = vadd.xlane.f32.xlu1 %v1085_v27  ;;  %1080 = vadd.xlane.f32.xlu0 %v1079_v21  ;;  %v1106_v55 = vsel %vm150_vm1, %v1070_v49, 0.0  ;;  %v1115_v0 = vsel %vm150_vm1, %v1073_v56, 0.0  ;;  %v1112_v5 = vsel %vm150_vm1, %v1072_v58, 0.0  ;;  %v1074_v9 = vmul.f32 %v1058_v3, %v1058_v3 }
 0x2e8   :  { %v1121_v10 = vsel %vm150_vm1, %v1075_v7, 0.0 }
 0x2e9   :  { %v1118_v13 = vsel %vm150_vm1, %v1074_v9, 0.0 }
 0x2eb   :  { %1092 = vadd.xlane.f32.xlu1 %v1091_v32  ;;  %1089 = vadd.xlane.f32.xlu0 %v1088_v33 }
 0x2ef   :  { %1098 = vadd.xlane.f32.xlu1 %v1097_v40  ;;  %1095 = vadd.xlane.f32.xlu0 %v1094_v41 }
 0x2f3   :  { %1104 = vadd.xlane.f32.xlu1 %v1103_v46  ;;  %1101 = vadd.xlane.f32.xlu0 %v1100_v47 }
 0x2f7   :  { %1110 = vadd.xlane.f32.xlu1 %v1109_v54  ;;  %1107 = vadd.xlane.f32.xlu0 %v1106_v55 }
 0x2fb   :  { %1116 = vadd.xlane.f32.xlu1 %v1115_v0  ;;  %1113 = vadd.xlane.f32.xlu0 %v1112_v5 }
 0x2ff   :  { %1122 = vadd.xlane.f32.xlu1 %v1121_v10  ;;  %1119 = vadd.xlane.f32.xlu0 %v1118_v13 }
 0x370   :  { %v1084_v14 = vpop.xlane.xlu1 %1083  ;;  %v1078_v11 = vpop.xlane.xlu0 %1077 }
 0x371   :  { %1127 = vst.msk [vmem:[%s2057_s8 + $0x10] sm:$0xff] %vm1124_vm2, %v1084_v14  ;;  %1125 = vst.msk [vmem:[%s2057_s8] sm:$0xff] %vm1124_vm2, %v1078_v11 }
 0x374   :  { %v1087_v15 = vpop.xlane.xlu1 %1086  ;;  %v1081_v6 = vpop.xlane.xlu0 %1080 }
 0x375   :  { %1128 = vst.msk [vmem:[%s2057_s8 + $0x18] sm:$0xff] %vm1124_vm2, %v1087_v15  ;;  %1126 = vst.msk [vmem:[%s2057_s8 + $0x8] sm:$0xff] %vm1124_vm2, %v1081_v6 }
 0x378   :  { %v1093_v17 = vpop.xlane.xlu1 %1092  ;;  %v1090_v4 = vpop.xlane.xlu0 %1089 }
 0x379   :  { %1130 = vst.msk [vmem:[%s2057_s8 + $0x28] sm:$0xff] %vm1124_vm2, %v1093_v17  ;;  %1129 = vst.msk [vmem:[%s2057_s8 + $0x20] sm:$0xff] %vm1124_vm2, %v1090_v4 }
 0x37c   :  { %v1099_v16 = vpop.xlane.xlu1 %1098  ;;  %v1096_v18 = vpop.xlane.xlu0 %1095 }
 0x37d   :  { %1132 = vst.msk [vmem:[%s2057_s8 + $0x38] sm:$0xff] %vm1124_vm2, %v1099_v16  ;;  %1131 = vst.msk [vmem:[%s2057_s8 + $0x30] sm:$0xff] %vm1124_vm2, %v1096_v18 }
 0x380   :  { %v1105_v19 = vpop.xlane.xlu1 %1104  ;;  %v1102_v26 = vpop.xlane.xlu0 %1101 }
 0x381   :  { %1134 = vst.msk [vmem:[%s2057_s8 + $0x48] sm:$0xff] %vm1124_vm2, %v1105_v19  ;;  %1133 = vst.msk [vmem:[%s2057_s8 + $0x40] sm:$0xff] %vm1124_vm2, %v1102_v26 }
 0x384   :  { %v1111_v20 = vpop.xlane.xlu1 %1110  ;;  %v1108_v22 = vpop.xlane.xlu0 %1107 }
 0x385   :  { %1136 = vst.msk [vmem:[%s2057_s8 + $0x58] sm:$0xff] %vm1124_vm2, %v1111_v20  ;;  %1135 = vst.msk [vmem:[%s2057_s8 + $0x50] sm:$0xff] %vm1124_vm2, %v1108_v22 }
 0x388   :  { %v1117_v29 = vpop.xlane.xlu1 %1116  ;;  %v1114_v23 = vpop.xlane.xlu0 %1113 }
 0x389   :  { %1138 = vst.msk [vmem:[%s2057_s8 + $0x68] sm:$0xff] %vm1124_vm2, %v1117_v29  ;;  %1137 = vst.msk [vmem:[%s2057_s8 + $0x60] sm:$0xff] %vm1124_vm2, %v1114_v23 }
 0x38c   :  { %v1123_v24 = vpop.xlane.xlu1 %1122  ;;  %v1120_v38 = vpop.xlane.xlu0 %1119 }
 0x38d   :  { %1140 = vst.msk [vmem:[%s2057_s8 + $0x78] sm:$0xff] %vm1124_vm2, %v1123_v24  ;;  %1139 = vst.msk [vmem:[%s2057_s8 + $0x70] sm:$0xff] %vm1124_vm2, %v1120_v38 }

</bundles_post_ra>
